<compile_context>
chip_gen: v7x
topology: tpu7x:2x2x1
jax: 0.10.0
libtpu: 0.0.40
codegen_flags: <defaults>
</compile_context>

<pallas_src>
import functools
import math

import numpy as np
import jax
import jax.numpy as jnp
from jax.experimental import pallas as pl
from jax.experimental.pallas import tpu as pltpu

LANES = 128


# ---------------------------------------------------------------------------
# Parameter-slab row layout (all blocks start at lane 0; 2-D blocks 8-aligned).
# ---------------------------------------------------------------------------
def param_layout(in_ch, hidden, heads, n_pad):
    assert 3 * hidden <= LANES and 2 * n_pad <= LANES and 2 * in_ch <= LANES
    lay = {}
    lay["P"] = 0                       # 2 rows : pooling vectors, lanes 0:2*n_pad
    lay["FB"] = 2                      # 2 rows : conv1 / conv2 bias, lanes 0:H
    lay["BQKV"] = 4                    # 1 row  : in_proj bias, lanes 0:3H
    lay["BO"] = 5                      # 1 row  : out_proj bias
    lay["GAMMA"] = 6                   # 1 row  : LayerNorm weight
    lay["BETA"] = 7                    # 1 row  : LayerNorm bias
    lay["SEGT"] = 8                    # nh rows: head-broadcast matrix [nh, H]
    lay["BHEAD"] = 8 + heads           # 1 row  : head bias (lanes 0:O)
    base = -(-(8 + heads + 1) // 8) * 8
    lay["SEG"] = base                  # H rows : head-sum matrix [H, nh]
    lay["WSTK"] = base + hidden        # 2C rows: [W1 ; W2] stacked  [2C, H]
    lay["WQKV"] = lay["WSTK"] + 2 * in_ch   # H rows: in_proj_weight.T [H, 3H]
    lay["WO"] = lay["WQKV"] + hidden        # H rows: out_proj.weight.T [H, H]
    lay["WHEAD"] = lay["WO"] + hidden       # H rows: output_layer.weight.T, padded [H, 128]
    lay["ROWS"] = -(-(lay["WHEAD"] + hidden) // 8) * 8
    return lay


# ---------------------------------------------------------------------------
# Fused kernel: (GCN conv + mean pool) x2 -> MHA fusion -> LayerNorm -> head.
#   x_ref   [1, 2*NP, 128]  block-diag node features (ego block | cut block)
#   par_ref [ROWS, 128]     packed parameter slab (resident across the batch grid)
#   o_ref   [1, 8, 128]     lane-dense output; row 0 lanes 0:O are the result
# ---------------------------------------------------------------------------
def encoder_kernel(x_ref, par_ref, o_ref, *, hidden, heads, in_ch, n_pad, lay):
    H = hidden
    hd = H // heads
    scale = 1.0 / math.sqrt(hd)
    bf = jnp.bfloat16
    f32 = jnp.float32

    x = x_ref[0]                                                     # [2NP, 128]

    # ---- both GCN branches + mean pool as two tiny matmuls (block-diagonal) ----
    pvec = par_ref[lay["P"]:lay["P"] + 2, 0:2 * n_pad]               # [2, 2NP]
    pooled = jnp.dot(pvec.astype(bf), x.astype(bf),
                     preferred_element_type=f32)                     # [2, 128]
    wstk = par_ref[lay["WSTK"]:lay["WSTK"] + 2 * in_ch, 0:H]         # [2C, H]
    f = jnp.dot(pooled[:, 0:2 * in_ch].astype(bf), wstk.astype(bf),
                preferred_element_type=f32)
    f = f + par_ref[lay["FB"]:lay["FB"] + 2, 0:H]                    # [2, H]

    # ---- fused QKV projection ----
    wqkv = par_ref[lay["WQKV"]:lay["WQKV"] + H, 0:3 * H]             # [H, 3H]
    qkv = jnp.dot(f.astype(bf), wqkv.astype(bf), preferred_element_type=f32)
    qkv = qkv + par_ref[lay["BQKV"]:lay["BQKV"] + 1, 0:3 * H]        # [2, 3H]
    q = qkv[:, 0:H] * scale
    k = qkv[:, H:2 * H]
    v = qkv[:, 2 * H:3 * H]

    # ---- 2-token multi-head self-attention ----
    # softmax over 2 keys == sigmoid of the per-head score difference;
    # the "other" token is reached via broadcast sums (no roll/slice/concat).
    ksum = jnp.sum(k, axis=0, keepdims=True)                         # [1, H]
    vsum = jnp.sum(v, axis=0, keepdims=True)                         # [1, H]
    kdiff = ksum - 2.0 * k                                           # row i: k[1-i]-k[i]
    seg = par_ref[lay["SEG"]:lay["SEG"] + H, 0:heads]                # [H, nh]
    d = jnp.dot((q * kdiff).astype(bf), seg.astype(bf),
                preferred_element_type=f32)                          # [2, nh]
    p_off = 1.0 / (1.0 + jnp.exp(-d))                                # attn weight to other token
    segT = par_ref[lay["SEGT"]:lay["SEGT"] + heads, 0:H]             # [nh, H]
    p_b = jnp.dot(p_off.astype(bf), segT.astype(bf),
                  preferred_element_type=f32)                        # [2, H]
    attn = v + p_b * (vsum - 2.0 * v)                                # [2, H]

    # ---- out projection + residual LayerNorm + mean over the 2 views + head ----
    wo = par_ref[lay["WO"]:lay["WO"] + H, 0:H]
    attended = jnp.dot(attn.astype(bf), wo.astype(bf), preferred_element_type=f32)
    attended = attended + par_ref[lay["BO"]:lay["BO"] + 1, 0:H]

    y = attended + f
    mu = jnp.mean(y, axis=-1, keepdims=True)
    var = jnp.mean((y - mu) ** 2, axis=-1, keepdims=True)
    yn = (y - mu) * jax.lax.rsqrt(var + 1e-5)
    yn = (yn * par_ref[lay["GAMMA"]:lay["GAMMA"] + 1, 0:H]
          + par_ref[lay["BETA"]:lay["BETA"] + 1, 0:H])

    fused = jnp.mean(yn, axis=0, keepdims=True)                      # [1, H]
    whead = par_ref[lay["WHEAD"]:lay["WHEAD"] + H, :]                # [H, 128]
    bhead = par_ref[lay["BHEAD"]:lay["BHEAD"] + 1, :]                # [1, 128]
    head = jnp.dot(jnp.broadcast_to(fused, (8, H)).astype(bf), whead.astype(bf),
                   preferred_element_type=f32) + bhead               # [8, 128]
    o_ref[0] = head


def high_order_gnn_encoder(x_bd, params, *, hidden, heads, in_ch, n_pad, out_dim, lay):
    B, rows_x, lanes = x_bd.shape
    kern = functools.partial(encoder_kernel, hidden=hidden, heads=heads,
                             in_ch=in_ch, n_pad=n_pad, lay=lay)
    out = pl.pallas_call(
        kern,
        out_shape=jax.ShapeDtypeStruct((B, 8, LANES), jnp.float32),
        grid=(B,),
        in_specs=[pl.BlockSpec((1, rows_x, lanes), lambda b: (b, 0, 0)),
                  pl.BlockSpec(params.shape, lambda b: (0, 0))],
        out_specs=pl.BlockSpec((1, 8, LANES), lambda b: (b, 0, 0)),
        compiler_params=pltpu.CompilerParams(dimension_semantics=("parallel",)),
    )(x_bd, params)
    return out[:, 0, :out_dim]


# ---------------------------------------------------------------------------
# Host-side (numpy) static graph construction and parameter packing.
# ---------------------------------------------------------------------------
def ring_adj_normalized(n):
    a = np.zeros((n, n), np.float32)
    idx = np.arange(n)
    a[(idx + 1) % n, idx] = 1.0
    a[idx, (idx + 1) % n] = 1.0
    a = a + np.eye(n, dtype=np.float32)          # add_self_loops=True
    deg = a.sum(axis=1)
    dinv = 1.0 / np.sqrt(deg)
    return a * dinv[:, None] * dinv[None, :]     # D^-1/2 (A+I) D^-1/2


def pack_params(lay, *, in_ch, hidden, heads, n_pad, out_dim,
                adj_ego, adj_cut, w1, b1, w2, b2, in_proj_w, in_proj_b,
                out_proj_w, out_proj_b, gamma, beta, head_w, head_b):
    H, C, nh, O = hidden, in_ch, heads, out_dim
    n_ego, n_cut = adj_ego.shape[0], adj_cut.shape[0]
    slab = np.zeros((lay["ROWS"], LANES), np.float32)
    # pooling vectors: colsum(adj_norm)/n folds GCN propagation + mean pool
    slab[lay["P"] + 0, 0:n_ego] = adj_ego.sum(axis=0) / n_ego
    slab[lay["P"] + 1, n_pad:n_pad + n_cut] = adj_cut.sum(axis=0) / n_cut
    slab[lay["FB"] + 0, :H] = np.asarray(b1)
    slab[lay["FB"] + 1, :H] = np.asarray(b2)
    slab[lay["BQKV"], :3 * H] = np.asarray(in_proj_b)
    slab[lay["BO"], :H] = np.asarray(out_proj_b)
    slab[lay["GAMMA"], :H] = np.asarray(gamma)
    slab[lay["BETA"], :H] = np.asarray(beta)
    slab[lay["BHEAD"], :O] = np.asarray(head_b)
    seg = (np.arange(H)[:, None] // (H // nh) == np.arange(nh)[None, :]).astype(np.float32)
    slab[lay["SEG"]:lay["SEG"] + H, :nh] = seg
    slab[lay["SEGT"]:lay["SEGT"] + nh, :H] = seg.T
    slab[lay["WSTK"]:lay["WSTK"] + C, :H] = np.asarray(w1)
    slab[lay["WSTK"] + C:lay["WSTK"] + 2 * C, :H] = np.asarray(w2)
    slab[lay["WQKV"]:lay["WQKV"] + H, :3 * H] = np.asarray(in_proj_w).T
    slab[lay["WO"]:lay["WO"] + H, :H] = np.asarray(out_proj_w).T
    slab[lay["WHEAD"]:lay["WHEAD"] + H, :O] = np.asarray(head_w).T
    return jnp.asarray(slab)


def pack_node_features(x_egos, x_cuts, *, in_ch, n_pad):
    B, n_ego, C = x_egos.shape
    n_cut = x_cuts.shape[1]
    xb = np.zeros((B, 2 * n_pad, LANES), np.float32)
    xb[:, :n_ego, :C] = np.asarray(x_egos)
    xb[:, n_pad:n_pad + n_cut, C:2 * C] = np.asarray(x_cuts)
    return jnp.asarray(xb)


# ---------------------------------------------------------------------------
# Pure-JAX reference of the PyTorch forward (f32 highest precision, per pair).
# ---------------------------------------------------------------------------
def reference(x_ego, x_cut, adj_ego, adj_cut, w1, b1, w2, b2,
              in_proj_w, in_proj_b, out_proj_w, out_proj_b,
              gamma, beta, head_w, head_b, num_heads):
    hp = jax.lax.Precision.HIGHEST
    H = w1.shape[1]
    hd = H // num_heads
    h_ego = jnp.dot(adj_ego, jnp.dot(x_ego, w1, precision=hp), precision=hp) + b1
    h_cut = jnp.dot(adj_cut, jnp.dot(x_cut, w2, precision=hp), precision=hp) + b2
    f = jnp.stack([h_ego.mean(0), h_cut.mean(0)])                    # [2, H]
    qkv = jnp.dot(f, in_proj_w.T, precision=hp) + in_proj_b
    q, k, v = qkv[:, :H], qkv[:, H:2 * H], qkv[:, 2 * H:]
    outs = []
    for h in range(num_heads):
        sl = slice(h * hd, (h + 1) * hd)
        sc = jnp.dot(q[:, sl] / math.sqrt(hd), k[:, sl].T, precision=hp)
        p = jax.nn.softmax(sc, axis=-1)
        outs.append(jnp.dot(p, v[:, sl], precision=hp))
    attn = jnp.concatenate(outs, axis=-1)
    attended = jnp.dot(attn, out_proj_w.T, precision=hp) + out_proj_b
    y = attended + f
    mu = y.mean(-1, keepdims=True)
    var = ((y - mu) ** 2).mean(-1, keepdims=True)
    yn = (y - mu) / jnp.sqrt(var + 1e-5) * gamma + beta
    fused = yn.mean(0)
    return jnp.dot(fused, head_w.T, precision=hp) + head_b           # [O]


if __name__ == "__main__":
    C, H, O = 16, 32, 8            # in_channels, hidden_channels, output_channels
    NUM_HEADS = 4                  # nn.MultiheadAttention(hidden, num_heads=4)
    N_EGO, N_CUT = 12, 10
    N_PAD = 16                     # per-graph padding inside the block-diag slab
    B = 4                          # batch of graph pairs (parallel grid axis)

    key = jax.random.PRNGKey(0)
    keys = iter(jax.random.split(key, 24))

    def u(shape, s=0.1):
        return jax.random.uniform(next(keys), shape, jnp.float32, -s, s)

    # runtime node features (B graph pairs, shared static ring topologies)
    x_egos = jax.random.normal(next(keys), (B, N_EGO, C), jnp.float32)
    x_cuts = jax.random.normal(next(keys), (B, N_CUT, C), jnp.float32)

    # deterministic synthetic parameters (PyTorch layouts)
    w1, b1 = u((C, H)), u((H,))               # conv1 GCNConv lin.weight.T, bias
    w2, b2 = u((C, H)), u((H,))               # conv2
    in_proj_w = u((3 * H, H))                 # MHA in_proj_weight  [3H, H]
    in_proj_b = u((3 * H,))
    out_proj_w = u((H, H))                    # MHA out_proj.weight [H, H]
    out_proj_b = u((H,))
    gamma = jnp.ones((H,), jnp.float32)       # LayerNorm weight
    beta = jnp.zeros((H,), jnp.float32)       # LayerNorm bias
    head_w = u((O, H))                        # output_layer.weight [O, H]
    head_b = u((O,))

    # static precomputed normalized ring adjacencies (host numpy)
    adj_ego_np = ring_adj_normalized(N_EGO)
    adj_cut_np = ring_adj_normalized(N_CUT)

    lay = param_layout(C, H, NUM_HEADS, N_PAD)
    params = pack_params(lay, in_ch=C, hidden=H, heads=NUM_HEADS, n_pad=N_PAD,
                         out_dim=O, adj_ego=adj_ego_np, adj_cut=adj_cut_np,
                         w1=w1, b1=b1, w2=w2, b2=b2,
                         in_proj_w=in_proj_w, in_proj_b=in_proj_b,
                         out_proj_w=out_proj_w, out_proj_b=out_proj_b,
                         gamma=gamma, beta=beta, head_w=head_w, head_b=head_b)
    x_bd = pack_node_features(x_egos, x_cuts, in_ch=C, n_pad=N_PAD)

    out = high_order_gnn_encoder(x_bd, params, hidden=H, heads=NUM_HEADS,
                                 in_ch=C, n_pad=N_PAD, out_dim=O, lay=lay)
    jax.block_until_ready(out)
    assert out.shape == (B, O)

    ref = jnp.stack([
        reference(x_egos[b], x_cuts[b],
                  jnp.asarray(adj_ego_np), jnp.asarray(adj_cut_np),
                  w1, b1, w2, b2, in_proj_w, in_proj_b, out_proj_w, out_proj_b,
                  gamma, beta, head_w, head_b, NUM_HEADS)
        for b in range(B)])

    # kernel matmuls are bf16-in / f32-acc (single MXU pass); 2e-2 is the
    # expected bf16-vs-f32 envelope for these contraction lengths.
    np.testing.assert_allclose(np.asarray(out), np.asarray(ref), rtol=2e-2, atol=2e-2)

    print("KERNEL_OK")
</pallas_src>

<mosaic_0001>
module attributes {stable_mosaic.version = 11 : i64} {
  func.func @encoder_kernel(%arg0: i32, %arg1: memref<1x32x128xf32, #tpu.memory_space<vmem>>, %arg2: memref<176x128xf32, #tpu.memory_space<vmem>>, %arg3: memref<1x8x128xf32, #tpu.memory_space<vmem>>) attributes {dimension_semantics = [#tpu.dimension_semantics<parallel>], iteration_bounds = array<i64: 4>, scalar_prefetch = 0 : i64, scratch_operands = 0 : i64, tpu.core_type = #tpu.core_type<tc>, window_params = [{transform_indices = @transform_0, window_bounds = array<i64: 1, 32, 128>}, {pipeline_mode = #tpu.pipeline_mode<synchronous>, transform_indices = @transform_1, window_bounds = array<i64: 176, 128>}, {transform_indices = @transform_2, window_bounds = array<i64: 1, 8, 128>}]} {
    %c0 = arith.constant 0 : index
    %c0_0 = arith.constant 0 : index
    %c0_1 = arith.constant 0 : index
    %0 = vector.load %arg1[%c0, %c0_0, %c0_1] : memref<1x32x128xf32, #tpu.memory_space<vmem>>, vector<1x32x128xf32>
    %1 = vector.shape_cast %0 : vector<1x32x128xf32> to vector<32x128xf32>
    %c0_2 = arith.constant 0 : index
    %c0_3 = arith.constant 0 : index
    %2 = vector.load %arg2[%c0_2, %c0_3] : memref<176x128xf32, #tpu.memory_space<vmem>>, vector<2x32xf32>
    %3 = arith.truncf %2 : vector<2x32xf32> to vector<2x32xbf16>
    %4 = arith.truncf %1 : vector<32x128xf32> to vector<32x128xbf16>
    %cst = arith.constant dense<0.000000e+00> : vector<2x128xf32>
    %5 = tpu.matmul %3, %4, %cst {dimension_numbers = #tpu.dot_dimension_numbers<[1], [0], [0], [1], [0, 0, 1, 1], [], []>} : vector<2x32xbf16>, vector<32x128xbf16>, vector<2x128xf32> -> vector<2x128xf32>
    %c48 = arith.constant 48 : index
    %c0_4 = arith.constant 0 : index
    %6 = vector.load %arg2[%c48, %c0_4] : memref<176x128xf32, #tpu.memory_space<vmem>>, vector<32x32xf32>
    %7 = vector.extract_strided_slice %5 {offsets = [0, 0], sizes = [2, 32], strides = [1, 1]} : vector<2x128xf32> to vector<2x32xf32>
    %8 = arith.truncf %7 : vector<2x32xf32> to vector<2x32xbf16>
    %9 = arith.truncf %6 : vector<32x32xf32> to vector<32x32xbf16>
    %cst_5 = arith.constant dense<0.000000e+00> : vector<2x32xf32>
    %10 = tpu.matmul %8, %9, %cst_5 {dimension_numbers = #tpu.dot_dimension_numbers<[1], [0], [0], [1], [0, 0, 1, 1], [], []>} : vector<2x32xbf16>, vector<32x32xbf16>, vector<2x32xf32> -> vector<2x32xf32>
    %c2 = arith.constant 2 : index
    %c0_6 = arith.constant 0 : index
    %11 = vector.load %arg2[%c2, %c0_6] : memref<176x128xf32, #tpu.memory_space<vmem>>, vector<2x32xf32>
    %12 = arith.addf %10, %11 : vector<2x32xf32>
    %c80 = arith.constant 80 : index
    %c0_7 = arith.constant 0 : index
    %13 = vector.load %arg2[%c80, %c0_7] : memref<176x128xf32, #tpu.memory_space<vmem>>, vector<32x96xf32>
    %14 = arith.truncf %12 : vector<2x32xf32> to vector<2x32xbf16>
    %15 = arith.truncf %13 : vector<32x96xf32> to vector<32x96xbf16>
    %cst_8 = arith.constant dense<0.000000e+00> : vector<2x96xf32>
    %16 = tpu.matmul %14, %15, %cst_8 {dimension_numbers = #tpu.dot_dimension_numbers<[1], [0], [0], [1], [0, 0, 1, 1], [], []>} : vector<2x32xbf16>, vector<32x96xbf16>, vector<2x96xf32> -> vector<2x96xf32>
    %c4 = arith.constant 4 : index
    %c0_9 = arith.constant 0 : index
    %17 = vector.load %arg2[%c4, %c0_9] : memref<176x128xf32, #tpu.memory_space<vmem>>, vector<1x96xf32>
    %18 = vector.broadcast %17 : vector<1x96xf32> to vector<2x96xf32>
    %19 = arith.addf %16, %18 : vector<2x96xf32>
    %20 = vector.extract_strided_slice %19 {offsets = [0, 0], sizes = [2, 32], strides = [1, 1]} : vector<2x96xf32> to vector<2x32xf32>
    %cst_10 = arith.constant 0.353553385 : f32
    %21 = vector.broadcast %cst_10 : f32 to vector<2x32xf32>
    %22 = arith.mulf %20, %21 : vector<2x32xf32>
    %23 = vector.extract_strided_slice %19 {offsets = [0, 32], sizes = [2, 32], strides = [1, 1]} : vector<2x96xf32> to vector<2x32xf32>
    %24 = vector.extract_strided_slice %19 {offsets = [0, 64], sizes = [2, 32], strides = [1, 1]} : vector<2x96xf32> to vector<2x32xf32>
    %cst_11 = arith.constant dense<0.000000e+00> : vector<32xf32>
    %25 = vector.multi_reduction <add>, %23, %cst_11 [0] : vector<2x32xf32> to vector<32xf32>
    %26 = vector.shape_cast %25 : vector<32xf32> to vector<1x32xf32>
    %cst_12 = arith.constant dense<0.000000e+00> : vector<32xf32>
    %27 = vector.multi_reduction <add>, %24, %cst_12 [0] : vector<2x32xf32> to vector<32xf32>
    %28 = vector.shape_cast %27 : vector<32xf32> to vector<1x32xf32>
    %cst_13 = arith.constant 2.000000e+00 : f32
    %29 = vector.broadcast %cst_13 : f32 to vector<2x32xf32>
    %30 = arith.mulf %29, %23 : vector<2x32xf32>
    %31 = vector.broadcast %26 : vector<1x32xf32> to vector<2x32xf32>
    %32 = arith.subf %31, %30 : vector<2x32xf32>
    %c16 = arith.constant 16 : index
    %c0_14 = arith.constant 0 : index
    %33 = vector.load %arg2[%c16, %c0_14] : memref<176x128xf32, #tpu.memory_space<vmem>>, vector<32x4xf32>
    %34 = arith.mulf %22, %32 : vector<2x32xf32>
    %35 = arith.truncf %34 : vector<2x32xf32> to vector<2x32xbf16>
    %36 = arith.truncf %33 : vector<32x4xf32> to vector<32x4xbf16>
    %cst_15 = arith.constant dense<0.000000e+00> : vector<2x4xf32>
    %37 = tpu.matmul %35, %36, %cst_15 {dimension_numbers = #tpu.dot_dimension_numbers<[1], [0], [0], [1], [0, 0, 1, 1], [], []>} : vector<2x32xbf16>, vector<32x4xbf16>, vector<2x4xf32> -> vector<2x4xf32>
    %cst_16 = arith.constant 0.000000e+00 : f32
    %38 = vector.broadcast %cst_16 : f32 to vector<2x4xf32>
    %39 = arith.subf %38, %37 : vector<2x4xf32>
    %40 = math.exp %39 : vector<2x4xf32>
    %cst_17 = arith.constant 1.000000e+00 : f32
    %41 = vector.broadcast %cst_17 : f32 to vector<2x4xf32>
    %42 = arith.addf %41, %40 : vector<2x4xf32>
    %cst_18 = arith.constant 1.000000e+00 : f32
    %43 = vector.broadcast %cst_18 : f32 to vector<2x4xf32>
    %44 = arith.divf %43, %42 : vector<2x4xf32>
    %c8 = arith.constant 8 : index
    %c0_19 = arith.constant 0 : index
    %45 = vector.load %arg2[%c8, %c0_19] : memref<176x128xf32, #tpu.memory_space<vmem>>, vector<4x32xf32>
    %46 = arith.truncf %44 : vector<2x4xf32> to vector<2x4xbf16>
    %47 = arith.truncf %45 : vector<4x32xf32> to vector<4x32xbf16>
    %cst_20 = arith.constant dense<0.000000e+00> : vector<2x32xf32>
    %48 = tpu.matmul %46, %47, %cst_20 {dimension_numbers = #tpu.dot_dimension_numbers<[1], [0], [0], [1], [0, 0, 1, 1], [], []>} : vector<2x4xbf16>, vector<4x32xbf16>, vector<2x32xf32> -> vector<2x32xf32>
    %cst_21 = arith.constant 2.000000e+00 : f32
    %49 = vector.broadcast %cst_21 : f32 to vector<2x32xf32>
    %50 = arith.mulf %49, %24 : vector<2x32xf32>
    %51 = vector.broadcast %28 : vector<1x32xf32> to vector<2x32xf32>
    %52 = arith.subf %51, %50 : vector<2x32xf32>
    %53 = arith.mulf %48, %52 : vector<2x32xf32>
    %54 = arith.addf %24, %53 : vector<2x32xf32>
    %c112 = arith.constant 112 : index
    %c0_22 = arith.constant 0 : index
    %55 = vector.load %arg2[%c112, %c0_22] : memref<176x128xf32, #tpu.memory_space<vmem>>, vector<32x32xf32>
    %56 = arith.truncf %54 : vector<2x32xf32> to vector<2x32xbf16>
    %57 = arith.truncf %55 : vector<32x32xf32> to vector<32x32xbf16>
    %cst_23 = arith.constant dense<0.000000e+00> : vector<2x32xf32>
    %58 = tpu.matmul %56, %57, %cst_23 {dimension_numbers = #tpu.dot_dimension_numbers<[1], [0], [0], [1], [0, 0, 1, 1], [], []>} : vector<2x32xbf16>, vector<32x32xbf16>, vector<2x32xf32> -> vector<2x32xf32>
    %c5 = arith.constant 5 : index
    %c0_24 = arith.constant 0 : index
    %59 = vector.load %arg2[%c5, %c0_24] : memref<176x128xf32, #tpu.memory_space<vmem>>, vector<1x32xf32>
    %60 = vector.broadcast %59 : vector<1x32xf32> to vector<2x32xf32>
    %61 = arith.addf %58, %60 : vector<2x32xf32>
    %62 = arith.addf %61, %12 : vector<2x32xf32>
    %cst_25 = arith.constant dense<0.000000e+00> : vector<2xf32>
    %63 = vector.multi_reduction <add>, %62, %cst_25 [1] : vector<2x32xf32> to vector<2xf32>
    %64 = vector.shape_cast %63 : vector<2xf32> to vector<2x1xf32>
    %cst_26 = arith.constant 3.200000e+01 : f32
    %65 = vector.broadcast %cst_26 : f32 to vector<2x1xf32>
    %66 = arith.divf %64, %65 : vector<2x1xf32>
    %67 = vector.broadcast %66 : vector<2x1xf32> to vector<2x32xf32>
    %68 = arith.subf %62, %67 : vector<2x32xf32>
    %69 = arith.mulf %68, %68 : vector<2x32xf32>
    %cst_27 = arith.constant dense<0.000000e+00> : vector<2xf32>
    %70 = vector.multi_reduction <add>, %69, %cst_27 [1] : vector<2x32xf32> to vector<2xf32>
    %71 = vector.shape_cast %70 : vector<2xf32> to vector<2x1xf32>
    %cst_28 = arith.constant 3.200000e+01 : f32
    %72 = vector.broadcast %cst_28 : f32 to vector<2x1xf32>
    %73 = arith.divf %71, %72 : vector<2x1xf32>
    %74 = vector.broadcast %66 : vector<2x1xf32> to vector<2x32xf32>
    %75 = arith.subf %62, %74 : vector<2x32xf32>
    %cst_29 = arith.constant 9.99999974E-6 : f32
    %76 = vector.broadcast %cst_29 : f32 to vector<2x1xf32>
    %77 = arith.addf %73, %76 : vector<2x1xf32>
    %78 = math.rsqrt %77 : vector<2x1xf32>
    %79 = vector.broadcast %78 : vector<2x1xf32> to vector<2x32xf32>
    %80 = arith.mulf %75, %79 : vector<2x32xf32>
    %c6 = arith.constant 6 : index
    %c0_30 = arith.constant 0 : index
    %81 = vector.load %arg2[%c6, %c0_30] : memref<176x128xf32, #tpu.memory_space<vmem>>, vector<1x32xf32>
    %82 = vector.broadcast %81 : vector<1x32xf32> to vector<2x32xf32>
    %83 = arith.mulf %80, %82 : vector<2x32xf32>
    %c7 = arith.constant 7 : index
    %c0_31 = arith.constant 0 : index
    %84 = vector.load %arg2[%c7, %c0_31] : memref<176x128xf32, #tpu.memory_space<vmem>>, vector<1x32xf32>
    %85 = vector.broadcast %84 : vector<1x32xf32> to vector<2x32xf32>
    %86 = arith.addf %83, %85 : vector<2x32xf32>
    %cst_32 = arith.constant dense<0.000000e+00> : vector<32xf32>
    %87 = vector.multi_reduction <add>, %86, %cst_32 [0] : vector<2x32xf32> to vector<32xf32>
    %88 = vector.shape_cast %87 : vector<32xf32> to vector<1x32xf32>
    %cst_33 = arith.constant 2.000000e+00 : f32
    %89 = vector.broadcast %cst_33 : f32 to vector<1x32xf32>
    %90 = arith.divf %88, %89 : vector<1x32xf32>
    %c144 = arith.constant 144 : index
    %c0_34 = arith.constant 0 : index
    %91 = vector.load %arg2[%c144, %c0_34] : memref<176x128xf32, #tpu.memory_space<vmem>>, vector<32x128xf32>
    %c12 = arith.constant 12 : index
    %c0_35 = arith.constant 0 : index
    %92 = vector.load %arg2[%c12, %c0_35] : memref<176x128xf32, #tpu.memory_space<vmem>>, vector<1x128xf32>
    %93 = vector.shape_cast %90 : vector<1x32xf32> to vector<1x32xf32>
    %94 = vector.broadcast %93 : vector<1x32xf32> to vector<8x32xf32>
    %95 = arith.truncf %94 : vector<8x32xf32> to vector<8x32xbf16>
    %96 = arith.truncf %91 : vector<32x128xf32> to vector<32x128xbf16>
    %cst_36 = arith.constant dense<0.000000e+00> : vector<8x128xf32>
    %97 = tpu.matmul %95, %96, %cst_36 {dimension_numbers = #tpu.dot_dimension_numbers<[1], [0], [0], [1], [0, 0, 1, 1], [], []>} : vector<8x32xbf16>, vector<32x128xbf16>, vector<8x128xf32> -> vector<8x128xf32>
    %98 = vector.broadcast %92 : vector<1x128xf32> to vector<8x128xf32>
    %99 = arith.addf %97, %98 : vector<8x128xf32>
    %c0_37 = arith.constant 0 : index
    %c0_38 = arith.constant 0 : index
    %c0_39 = arith.constant 0 : index
    %100 = vector.load %arg3[%c0_37, %c0_38, %c0_39] : memref<1x8x128xf32, #tpu.memory_space<vmem>>, vector<1x8x128xf32>
    %101 = vector.shape_cast %100 : vector<1x8x128xf32> to vector<8x128xf32>
    %102 = vector.shape_cast %99 : vector<8x128xf32> to vector<1x8x128xf32>
    tpu.vector_store %arg3[%c0_37, %c0_38, %c0_39], %102 {strides = array<i32>} : memref<1x8x128xf32, #tpu.memory_space<vmem>>, vector<1x8x128xf32>,
    return
  }
  func.func @transform_0(%arg0: i32) -> (i32, i32, i32) {
    %c0_i32 = arith.constant 0 : i32
    %c0_i32_0 = arith.constant 0 : i32
    %c0_i32_1 = arith.constant 0 : i32
    return %arg0, %c0_i32, %c0_i32_0 : i32, i32, i32
  }
  func.func @transform_1(%arg0: i32) -> (i32, i32) {
    %c0_i32 = arith.constant 0 : i32
    %c0_i32_0 = arith.constant 0 : i32
    %c0_i32_1 = arith.constant 0 : i32
    return %c0_i32, %c0_i32_0 : i32, i32
  }
  func.func @transform_2(%arg0: i32) -> (i32, i32, i32) {
    %c0_i32 = arith.constant 0 : i32
    %c0_i32_0 = arith.constant 0 : i32
    %c0_i32_1 = arith.constant 0 : i32
    return %arg0, %c0_i32, %c0_i32_0 : i32, i32, i32
  }
}

</mosaic_0001>

<bundles_post_ra>
// kernel: tpu_custom_call.1
= control target key start
LH: loop header
LB: loop body
LE: loop exit
PB: predicated region body
PF: predicated region fallthrough
CT: control target
= control target key end

     0   :  { %7 = vsyncpa [#allocation3], 0  ;;  %s1296_s0 = inlined_call_operand.hbm [shape: f32[4,32,128], index: 0, kind: input, shape index: {}]   ;;  %s1297_s1 = inlined_call_operand.hbm [shape: f32[176,128], index: 1, kind: input, shape index: {}]   ;;  %s1298_s2 = inlined_call_operand.hbm [shape: f32[4,8,128], index: 2, kind: output, shape index: {}]  }
   0x1   :  { %9 = vsyncpa [#allocation3 + $0x1], 0 }
   0x2   :  { %10 = vsyncpa [#allocation6], 0 }
   0x3   :  { %11 = vsyncpa [#allocation4], 0 }
   0x4   :  { %13 = vsyncpa [#allocation4 + $0x1], 0  ;;  %s1048_s9 = smov 0   ;;  %s1050_s10 = smov 0  }
   0x5   :  { %s1052_s11 = smov 0   ;;  %s1054_s12 = smov 0  }
   0x6 LB: > { %s1069_s13 = sadd.s32 4294967295, %s1022_s12   ;;  %s723_s14 = sadd.s32 4294967294, %s1022_s12   ;;  %s1022_s12 = sphi %s1054_s12, %s1317_s12   ;;  %s1018_s11 = sphi %s1052_s11, %s1316_s11   ;;  %s1014_s10 = sphi %s1050_s10, %s1315_s10   ;;  %s1010_s9 = sphi %s1048_s9, %s1314_s9  }
   0x7   : > { %p39_p0 = scmp.ne.s32.totalorder %s1014_s10, %s1010_s9  ;;  %p1299_p1 = scmp.eq.s32.totalorder %s1069_s13, 0 }
   0x8   : > { %p90_p3 = scmp.eq.s32.totalorder %s723_s14, 3  ;;  %p724_p5 = scmp.ge.s32.totalorder %s1022_s12, 1 }
   0x9   : > { %p1078_p4 = por %p1299_p1, %p39_p0  ;;  %p97_p7 = scmp.lt.s32.totalorder %s1022_s12, 5 }
   0xa   : > { %p1083_p6 = por %p90_p3, %p39_p0  ;;  %s1024_s18 = smov [#allocation5]  }
   0xb   : > { %s1302_s15 = scalar_select %p1078_p4, 1, 0 }
   0xc   : > { %s1303_s16 = scalar_select %p1083_p6, 1, 0 }
   0xd   : > { %p1088_p8 = pnand %p724_p5, %p97_p7  ;;  %s109_s19 = sshll.u32 %s1024_s18, 4  ;;  %s110_s19 = int_to_ptr.vmem [resolvable:$true] %s109_s19 }
   0xe   : > { %s1101_s21 = sadd.s32 1, %s1022_s12   ;;  %s26_s22 = sadd.s32 1, %s1018_s11 }
   0xf   : > { %s1304_s17 = scalar_select %p1088_p8, 1, 0 }
  0x10   : > { %p833_p9 = pneg %p1088_p8  ;;  %s23_s23 = ssub.s32 %s1022_s12, %s1101_s21 }
  0x11   : > { %s894_s26 = scalar_lea.hbm %s1297_s1, 2816 }
  0x12   : > { %p1096_p10 = pnand %p833_p9, %p1299_p1  ;;  %p895_p11 = scmp.ne.s32.totalorder %s1297_s1, %s894_s26 }
  0x13   : > { %p901_p3 = scmp.lt.u32.totalorder %s894_s26, %s1297_s1 }
  0x14   : > { %p896_p12 = pneg %p1096_p10 }
  0x16   : > { %p897_p13 = pnand %p896_p12, %p895_p11 }
  0x18   : > { %p898_p0 = pneg %p897_p13 }
  0x1a   : > { %p903_p5 = pnand %p901_p3, %p898_p0 }
  0x1c   : > { %906 = shalt.err (!%p903_p5)
}
  0x1d   : > { %s907_s3 = scalar_lea.vmem %s110_s19, 2816  ;;  %p915_p2 = scmp.lt.s32.totalorder %s110_s19, %s110_s19 }
  0x1e   : > { %p908_p7 = scmp.ne.s32.totalorder %s110_s19, %s907_s3  ;;  %p916_p6 = scmp.lt.s32.totalorder %s907_s3, %s907_s3 }
  0x20   : > { %p910_p9 = pnand %p908_p7, %p896_p12  ;;  %p917_p4 = por %p916_p6, %p915_p2 }
  0x22   : > { %p911_p1 = pneg %p910_p9 }
  0x24   : > { %p918_p8 = pnand %p917_p4, %p911_p1 }
  0x26   : > { %921 = shalt.err (!%p918_p8)
}
  0x27   : > { %s1025_s4 = smov 128   ;;  %s1026_s5 = smov 8  }
  0x28   : > { %836 = dma.hbm_to_vmem [thread:$0]  (!%p1096_p10), %s1297_s1, 2816, %s110_s19, [#allocation6], %s1025_s4, %s1025_s4, %s1026_s5  }
  0x29   : > { %p24_p1 = scmp.eq.s32.totalorder %s23_s23, 0  ;;  %p33_p2 = scmp.ne.s32.totalorder %s1018_s11, %s1014_s10 }
  0x2a   : > { %p34_p4 = scmp.eq.s32.totalorder %s1022_s12, 0  ;;  %p846_p6 = scmp.lt.s32.totalorder %s1022_s12, 4 }
  0x2b   : > { %s1130_s8 = scalar_select %p24_p1, %s1018_s11, %s26_s22  }
  0x2c   : > { %p35_p8 = por %p34_p4, %p33_p2  ;;  %p1306_p11 = scmp.eq.s32.totalorder %s1069_s13, 3 }
  0x2d   : > { %s123_s18 = sand.u32 1, %s1018_s11   ;;  %s750_s20 = sshll.u32 %s1022_s12, 9 }
  0x2e   : > { %p1134_p12 = por %p1306_p11, %p33_p2  ;;  %s727_s24 = sshll.u32 %s123_s18, 5 }
  0x2f   : > { %s1143_s27 = scalar_lea.hbm %s1296_s0, %s750_s20  ;;  %s127_s19 = scalar_lea.vmem [#allocation2], %s727_s24 }
  0x30   : > { %s134_s22 = sshll.u32 %s127_s19, 4  ;;  %p1145_p10 = pnand %p846_p6, %p35_p8  ;;  %s1149_s22 = int_to_ptr.vmem [resolvable:$true] %s134_s22 }
  0x31   : > { %s1151_s28 = scalar_lea.sflag [#allocation3], %s123_s18  ;;  %s922_s29 = scalar_lea.hbm %s1143_s27, 512 }
  0x32   : > { %p923_p13 = scmp.ne.s32.totalorder %s1143_s27, %s922_s29  ;;  %p924_p0 = pneg %p1145_p10 }
  0x33   : > { %s927_s6 = scalar_lea.hbm %s1296_s0, 2048  ;;  %p928_p7 = scmp.lt.u32.totalorder %s1143_s27, %s1296_s0 }
  0x34   : > { %p925_p3 = pnand %p924_p0, %p923_p13  ;;  %p929_p9 = scmp.lt.u32.totalorder %s927_s6, %s922_s29 }
  0x35   : > { %p931_p2 = scmp.lt.u32.totalorder %s922_s29, %s1143_s27 }
  0x36   : > { %p926_p5 = pneg %p925_p3  ;;  %p930_p1 = por %p929_p9, %p928_p7 }
  0x38   : > { %p932_p4 = por %p931_p2, %p930_p1 }
  0x3a   : > { %p933_p6 = pnand %p932_p4, %p926_p5 }
  0x3c   : > { %936 = shalt.err (!%p933_p6)
}
  0x3d   : > { %s937_s18 = scalar_lea.vmem %s1149_s22, 512  ;;  %s1027_s24 = smov [#allocation2]  }
  0x3e   : > { %p938_p8 = scmp.ne.s32.totalorder %s1149_s22, %s937_s18  ;;  %s942_s25 = sshll.u32 %s1027_s24, 4  ;;  %s943_s25 = int_to_ptr.vmem [resolvable:$false] %s942_s25 }
  0x3f   : > { %s944_s26 = scalar_lea.vmem %s943_s25, 1024  ;;  %p945_p3 = scmp.lt.s32.totalorder %s1149_s22, %s943_s25 }
  0x40   : > { %p940_p11 = pnand %p938_p8, %p924_p0  ;;  %p946_p7 = scmp.lt.s32.totalorder %s944_s26, %s937_s18 }
  0x42   : > { %p941_p13 = pneg %p940_p11  ;;  %p947_p9 = por %p946_p7, %p945_p3 }
  0x44   : > { %p948_p1 = pnand %p947_p9, %p941_p13 }
  0x46   : > { %951 = shalt.err (!%p948_p1)
}
  0x47   : > { %840 = dma.hbm_to_vmem [thread:$0]  (!%p1145_p10), %s1143_s27, 512, %s1149_s22, %s1151_s28, %s1025_s4, %s1025_s4, %s1026_s5  }
  0x48   : > { %p1309_p0 = scmp.ne.s32.totalorder %s1304_s17, 0 }
  0x49   : > { %s1185_s19 = sand.u32 (!%p1309_p0), 1, %s1014_s10   ;;  %p1310_p5 = scmp.ne.s32.totalorder (!%p1309_p0), %s1302_s15, 0 }
  0x4a   : > { %146 = sbr.rel (%p1309_p0) target bundleno = 2337 (0x921), region = 28  ;;  %s731_s29 = sshll.u32 (!%p1309_p0), %s1185_s19, 5 }
  0x4b   : > { %s149_s30 = scalar_lea.sflag (!%p1309_p0), [#allocation3], %s1185_s19  ;;  %s152_s3 = scalar_lea.vmem (!%p1309_p0), [#allocation2], %s731_s29 }
  0x51   : > { %997 = dma.done.wait (%p1310_p5), %s149_s30, 512  }
  0x52   : > { %999 = vsyncadd (%p1310_p5), %s149_s30, 4294966784  ;;  %p1311_p2 = scmp.eq.s32.totalorder %s1069_s13, 0 }
  0x54   : > { %1001 = dma.done.wait (%p1311_p2), [#allocation6], 2816   ;;  %p1312_p10 = pmov %p1311_p2 }
  0x55   : > { %v1028_v0 = vmov 0.0   ;;  %vm1029_vm0 = vmmov 0   ;;  %v178_v1 = vld [vmem:[%s152_s3] sm:$0xff]  ;;  %v179_v2 = vld [vmem:[%s152_s3 + $0x8] sm:$0xff]  ;;  %v180_v3 = vld [vmem:[%s152_s3 + $0x10] sm:$0xff]  ;;  %vm186_vm1 = vcmask 261120  }
  0x56   : > { %1003 = vsyncadd (%p1312_p10), [#allocation6], 4294964480  ;;  %771 = vmatprep.subr.bf16.mxu0 %v1028_v0  ;;  %775 = vmatprep.mubr.msk.bf16.mxu0 %vm1029_vm0, %v1028_v0  ;;  %v184_v4 = vpack.c.bf16 %v179_v2, %v178_v1  ;;  %v181_v5 = vld [vmem:[%s152_s3 + $0x18] sm:$0xff]  ;;  %v230_v6 = vld [vmem:[#allocation5 + $0x30] sm:$0xff]  ;;  %vm337_vm2 = vcmask 517376   ;;  %vm345_vm3 = vcmask 779776  }
  0x57   : > { %779 = vmatprep.subr.bf16.mxu1 %v1028_v0  ;;  %783 = vmatprep.mubr.msk.bf16.mxu1 %vm1029_vm0, %v1028_v0  ;;  %v231_v7 = vld [vmem:[#allocation5 + $0x38] sm:$0xff]  ;;  %v185_v8 = vpack.c.bf16 %v181_v5, %v180_v3  ;;  %v182_v9 = vld [vmem:[#allocation5] sm:$0x3]  ;;  %v233_v13 = vld [vmem:[#allocation5 + $0x48] sm:$0xff]  ;;  %s1030_s15 = smov 96   ;;  %s1031_s17 = smov 64  }
  0x58   : > { %772 = vmatpush3.bf16.msra.mxu0 %v184_v4  ;;  %v235_v10 = vpack.c.bf16 %v231_v7, %v230_v6  ;;  %v183_v11 = vpack.c.bf16 %v182_v9, %v182_v9  ;;  %v232_v12 = vld [vmem:[#allocation5 + $0x40] sm:$0xff]  ;;  %v281_v15 = vld [vmem:[#allocation5 + $0x50] sm:$0xff]  ;;  %v282_v16 = vld [vmem:[#allocation5 + $0x58] sm:$0xff]  ;;  %vm423_vm4 = vcmask 1041408   ;;  %vm419_vm5 = vcmask 31744   ;;  %s733_s4 = sshll.u32 %s1185_s19, 3 }
  0x59   : > { %773 = vmatprep.subr.bf16.mxu0 %v1028_v0  ;;  %v236_v14 = vpack.c.bf16 %v233_v13, %v232_v12  ;;  %v286_v17 = vpack.c.bf16 %v282_v16, %v281_v15  ;;  %v283_v23 = vld [vmem:[#allocation5 + $0x60] sm:$0xff]  ;;  %v284_v24 = vld [vmem:[#allocation5 + $0x68] sm:$0xff]  ;;  %v355_v33 = vld [vmem:[#allocation5 + $0x10] sm:$0xff]  ;;  %vm537_vm6 = vcmask 254976   ;;  %s747_s5 = sshll.u32 %s1069_s13, 7  ;;  %s176_s27 = scalar_lea.vmem [#allocation7], %s733_s4 }
  0x5a   : > { %780 = vmatpush3.bf16.msra.mxu1 %v235_v10  ;;  %v287_v25 = vpack.c.bf16 %v284_v24, %v283_v23  ;;  %v237_v26 = vld [vmem:[#allocation5 + $0x2] sm:$0x3]  ;;  %v356_v34 = vld [vmem:[#allocation5 + $0x18] sm:$0xff]  ;;  %v736_v36 = vld [vmem:[#allocation5 + $0x4] ss:$0 sm:$0xff]  ;;  %s643_s22 = sshll.u32 %s176_s27, 4  ;;  %s1253_s6 = scalar_lea.hbm %s1298_s2, %s747_s5  ;;  %s1255_s22 = int_to_ptr.vmem [resolvable:$true] %s643_s22 }
  0x5b   : > { %781 = vmatprep.subr.bf16.mxu1 %v1028_v0  ;;  %v365_v35 = vpack.c.bf16 %v356_v34, %v355_v33  ;;  %v357_v46 = vld [vmem:[#allocation5 + $0x20] sm:$0xff]  ;;  %v358_v47 = vld [vmem:[#allocation5 + $0x28] sm:$0xff]  ;;  %v478_v16 = vld [vmem:[#allocation5 + $0x70] sm:$0xff]  ;;  %s630_s7 = scalar_lea.sflag [#allocation4], %s1185_s19  ;;  %s952_s13 = scalar_lea.vmem %s1255_s22, 128 }
  0x5c   : > { %774 = vmatpush3.bf16.msra.mxu0 %v185_v8  ;;  %v366_v48 = vpack.c.bf16 %v358_v47, %v357_v46  ;;  %v416_v3 = vld [vmem:[#allocation5 + $0x8] sm:$0xf]  ;;  %v740_v33 = vld [vmem:[#allocation5 + $0x5] ss:$0 sm:$0xff]  ;;  %v573_v46 = vld [vmem:[#allocation5 + $0x90] sm:$0xff]  ;;  %p953_p4 = scmp.ne.s32.totalorder %s1255_s22, %s952_s13  ;;  %s1032_s20 = smov [#allocation7]  }
  0x5d   : > { %787 = vmatprep.subr.bf16.mxu0 %v1028_v0  ;;  %v418_v4 = vpack.c.bf16 %v416_v3, %v416_v3  ;;  %v574_v47 = vld [vmem:[#allocation5 + $0x98] sm:$0xff]  ;;  %s956_s18 = sshll.u32 %s1032_s20, 4  ;;  %s957_s18 = int_to_ptr.vmem [resolvable:$false] %s956_s18 }
  0x5e   : > { %782 = vmatpush3.bf16.msra.mxu1 %v236_v14  ;;  %p954_p6 = pnand %p953_p4, %p1134_p12  ;;  %s958_s24 = scalar_lea.vmem %s957_s18, 256 }
  0x5f   : > { %776 = vmatmul.mubr.msk.bf16.vlgmr.msra.gmra.mrb[0].mxu0 %vm186_vm1, %v183_v11  ;;  %795 = vmatprep.subr.bf16.mxu1 %v1028_v0  ;;  %v425_v5 = vsel %vm423_vm4, %v418_v4, 0  ;;  %p959_p11 = scmp.lt.s32.totalorder %s1255_s22, %s957_s18  ;;  %p960_p13 = scmp.lt.s32.totalorder %s958_s24, %s952_s13 }
  0x60   : > { %791 = vmatprep.mubr.msk.bf16.mxu0 %vm1029_vm0, %v1028_v0  ;;  %788 = vmatpush3.bf16.msra.mxu0 %v286_v17  ;;  %v479_v17 = vld [vmem:[#allocation5 + $0x78] sm:$0xff]  ;;  %p955_p8 = pneg %p954_p6 }
  0x61   : > { %789 = vmatprep.subr.bf16.mxu0 %v1028_v0  ;;  %p961_p3 = por %p960_p13, %p959_p11 }
  0x63   : > { %p962_p7 = pnand %p961_p3, %p955_p8 }
  0x64   : > { %790 = vmatpush3.bf16.msra.mxu0 %v287_v25 }
  0x65   : > { %803 = vmatprep.subr.bf16.mxu0 %v1028_v0 }
 0x132   : > { %v224_v18 = vpop.f32.mrb[0].mxu0 }
 0x133   : > { %v234_v19 = vpack.c.bf16 %v224_v18, %v224_v18  ;;  %v777_v20 = vpop.f32.mrb[1].mxu0  ;;  %v480_v18 = vld [vmem:[#allocation5 + $0x80] sm:$0xff] }
 0x134   : > { %v227_v21 = vpop.f32.mrb[2].mxu0  ;;  %v481_v20 = vld [vmem:[#allocation5 + $0x88] sm:$0xff] }
 0x135   : > { %v778_v22 = vpop.f32.mrb[3].mxu0  ;;  %784 = vmatmul.mubr.msk.bf16.vlgmr.msra.gmra.mrb[0].mxu1 %vm186_vm1, %v234_v19  ;;  %v483_v19 = vpack.c.bf16 %v479_v17, %v478_v16  ;;  %v484_v21 = vpack.c.bf16 %v481_v20, %v480_v18 }
 0x136   : > { %799 = vmatprep.mubr.msk.bf16.mxu1 %vm1029_vm0, %v1028_v0  ;;  %796 = vmatpush3.bf16.msra.mxu1 %v365_v35 }
 0x137   : > { %797 = vmatprep.subr.bf16.mxu1 %v1028_v0 }
 0x13a   : > { %798 = vmatpush3.bf16.msra.mxu1 %v366_v48  ;;  %v575_v48 = vld [vmem:[#allocation5 + $0xa0] sm:$0xff] }
 0x13b   : > { %809 = vmatprep.subr.bf16.mxu1 %v1028_v0 }
 0x208   : > { %v275_v27 = vpop.f32.mrb[0].mxu1 }
 0x209   : > { %v1215_v28 = vadd.f32 %v275_v27, %v237_v26  ;;  %v785_v29 = vpop.f32.mrb[1].mxu1 }
 0x20a   : > { %v278_v30 = vpop.f32.mrb[2].mxu1 }
 0x20b   : > { %v285_v31 = vpack.c.bf16 %v1215_v28, %v1215_v28  ;;  %v786_v32 = vpop.f32.mrb[3].mxu1 }
 0x20d   : > { %792 = vmatmul.mubr.msk.bf16.vlgmr.msra.gmra.mrb[4].mxu0 %vm186_vm1, %v285_v31 }
 0x20e   : > { %805 = vmatprep.mubr.msk.bf16.mxu0 %vm1029_vm0, %v1028_v0  ;;  %804 = vmatpush3.bf16.msra.mxu0 %v425_v5  ;;  %v744_v5 = vld [vmem:[#allocation5 + $0xc] ss:$0 sm:$0xff] }
 0x20f   : > { %817 = vmatprep.subr.bf16.mxu0 %v1028_v0 }
 0x2e0   : > { %v330_v37 = vpop.f32.mrb[4].mxu0 }
 0x2e1   : > { %v1223_v38 = vadd.f32 %v736_v36, %v330_v37  ;;  %v793_v39 = vpop.f32.mrb[5].mxu0 }
 0x2e2   : > { %v333_v40 = vpop.f32.mrb[6].mxu0 }
 0x2e3   : > { %v794_v41 = vpop.f32.mrb[7].mxu0  ;;  %v338_v42 = vsel %vm337_vm2, %v1223_v38, 0.0  ;;  %v346_v43 = vsel %vm345_vm3, %v1223_v38, 0.0  ;;  %v353_v58 = vmul.f32 2.0, %v1223_v38  ;;  %v336_v62 = vmul.f32 0.35355338, %v1223_v38 }
 0x2e4   : > { %v339_v44 = vrot.slane %v338_v42, 4  ;;  %v347_v45 = vrot.slane %v346_v43, 4 }
 0x2e6   : > { %v340_v49 = vadd.f32 %v339_v44, %v338_v42  ;;  %v348_v50 = vadd.f32 %v347_v45, %v346_v43 }
 0x2e8   : > { %v341_v51 = vrot.slane %v340_v49, 2  ;;  %v349_v52 = vrot.slane %v348_v50, 2 }
 0x2ea   : > { %v342_v53 = vadd.f32 %v341_v51, %v340_v49  ;;  %v350_v54 = vadd.f32 %v349_v52, %v348_v50  ;;  %v579_v49 = vpack.c.bf16 %v574_v47, %v573_v46  ;;  %v576_v50 = vld [vmem:[#allocation5 + $0xa8] sm:$0xff] }
 0x2eb   : > { %v580_v51 = vpack.c.bf16 %v576_v50, %v575_v48 }
 0x2ec   : > { %v343_v55 = vrot.slane %v342_v53, 1  ;;  %v351_v56 = vrot.slane %v350_v54, 1 }
 0x2ee   : > { %v344_v57 = vadd.f32 %v343_v55, %v342_v53  ;;  %v352_v60 = vadd.f32 %v351_v56, %v350_v54  ;;  %v742_v55 = vld [vmem:[#allocation5 + $0x6] ss:$0 sm:$0xff] }
 0x2f0   : > { %v354_v59 = vsub.f32 %v344_v57, %v353_v58  ;;  %v467_v61 = vsub.f32 %v352_v60, %v353_v58  ;;  %v743_v57 = vld [vmem:[#allocation5 + $0x7] ss:$0 sm:$0xff] }
 0x2f2   : > { %360 = vrot.lane.b32.xlu0 %v354_v59, %s1030_s15 }
 0x2f6   : > { %469 = vrot.lane.b32.xlu0 %v467_v61, %s1031_s17 }
 0x364   : > { %v361_v63 = vpop.permute.xlu0 %360 }
 0x365   : > { %v363_v1 = vmul.f32 %v361_v63, %v336_v62 }
 0x367   : > { %v364_v2 = vpack.c.bf16 %v363_v1, %v363_v1 }
 0x368   : > { %v470_v22 = vpop.permute.xlu0 %469 }
 0x369   : > { %800 = vmatmul.mubr.msk.bf16.vlgmr.msra.gmra.mrb[4].mxu1 %vm186_vm1, %v364_v2 }
 0x36a   : > { %813 = vmatprep.mubr.msk.bf16.mxu1 %vm1029_vm0, %v1028_v0  ;;  %810 = vmatpush3.bf16.msra.mxu1 %v483_v19 }
 0x36b   : > { %811 = vmatprep.subr.bf16.mxu1 %v1028_v0 }
 0x36e   : > { %812 = vmatpush3.bf16.msra.mxu1 %v484_v21 }
 0x43c   : > { %v404_v6 = vpop.f32.mrb[4].mxu1 }
 0x43d   : > { %v410_v7 = vsub.f32 0.0, %v404_v6  ;;  %v801_v8 = vpop.f32.mrb[5].mxu1 }
 0x43e   : > { %v407_v9 = vpop.f32.mrb[6].mxu1 }
 0x43f   : > { %v411_v10 = vmul.f32 1.442695, %v410_v7  ;;  %v802_v11 = vpop.f32.mrb[7].mxu1 }
 0x441   : > { %888 = vpow2.f32 %v411_v10 }
 0x44b   : > { %v889_v12 = vpop.eup %888 }
 0x44c   : > { %v413_v13 = vadd.f32 1.0, %v889_v12 }
 0x44e   : > { %890 = vrcp.f32 %v413_v13 }
 0x458   : > { %v891_v14 = vpop.eup %890 }
 0x459   : > { %v417_v15 = vpack.c.bf16 %v891_v14, %v891_v14 }
 0x45b   : > { %806 = vmatmul.mubr.msk.bf16.vlgmr.msra.gmra.mrb[8].mxu0 %vm419_vm5, %v417_v15 }
 0x45c   : > { %821 = vmatprep.mubr.msk.bf16.mxu0 %vm1029_vm0, %v1028_v0  ;;  %818 = vmatpush3.bf16.msra.mxu0 %v579_v49 }
 0x45d   : > { %819 = vmatprep.subr.bf16.mxu0 %v1028_v0 }
 0x460   : > { %820 = vmatpush3.bf16.msra.mxu0 %v580_v51 }
 0x52e   : > { %v461_v23 = vpop.f32.mrb[8].mxu0 }
 0x52f   : > { %v472_v24 = vmul.f32 %v470_v22, %v461_v23  ;;  %v807_v25 = vpop.f32.mrb[9].mxu0 }
 0x530   : > { %v464_v26 = vpop.f32.mrb[10].mxu0 }
 0x531   : > { %474 = vrot.lane.b32.xlu1 %v472_v24, %s1031_s17  ;;  %v808_v27 = vpop.f32.mrb[11].mxu0 }
 0x5a3   : > { %v475_v29 = vpop.permute.xlu1 %474 }
 0x5a4   : > { %v477_v30 = vadd.f32 %v475_v29, %v1223_v38 }
 0x5a6   : > { %v482_v31 = vpack.c.bf16 %v477_v30, %v477_v30 }
 0x5a8   : > { %491 = vrot.lane.b32.xlu1 %v482_v31, %s1031_s17 }
 0x61a   : > { %v492_v32 = vpop.permute.xlu1 %491 }
 0x61b   : > { %814 = vmatmul.mubr.msk.bf16.vlgmr.msra.gmra.mrb[8].mxu1 %vm186_vm1, %v492_v32 }
 0x6ee   : > { %v530_v34 = vpop.f32.mrb[8].mxu1 }
 0x6ef   : > { %v531_v35 = vadd.f32 %v740_v33, %v530_v34  ;;  %v815_v36 = vpop.f32.mrb[9].mxu1 }
 0x6f0   : > { %v533_v37 = vpop.f32.mrb[10].mxu1 }
 0x6f1   : > { %v816_v39 = vpop.f32.mrb[11].mxu1  ;;  %v536_v40 = vadd.f32 %v531_v35, %v1215_v28 }
 0x6f3   : > { %v538_v41 = vsel %vm537_vm6, %v536_v40, 0.0 }
 0x6f4   : > { %539 = vadd.xlane.f32.xlu0 %v538_v41 }
 0x781   : > { %v540_v42 = vpop.xlane.xlu0 %539 }
 0x782   : > { %v542_v38 = vmul.f32 0.03125, %v540_v42 }
 0x784   : > { %v543_v43 = vsub.f32 %v536_v40, %v542_v38 }
 0x786   : > { %v544_v44 = vmul.f32 %v543_v43, %v543_v43 }
 0x788   : > { %v545_v45 = vsel %vm537_vm6, %v544_v44, 0.0 }
 0x789   : > { %546 = vadd.xlane.f32.xlu1 %v545_v45 }
 0x816   : > { %v547_v28 = vpop.xlane.xlu1 %546 }
 0x817   : > { %v548_v52 = vmul.f32 0.03125, %v547_v28 }
 0x819   : > { %v549_v53 = vadd.f32 1e-05, %v548_v52 }
 0x81b   : > { %892 = vrsqrt.f32 %v549_v53 }
 0x825   : > { %v893_v54 = vpop.eup %892 }
 0x826   : > { %v551_v56 = vmul.f32 %v893_v54, %v543_v43 }
 0x828   : > { %v557_v58 = vmul.f32 %v742_v55, %v551_v56 }
 0x82a   : > { %v563_v59 = vadd.f32 %v743_v57, %v557_v58 }
 0x82c   : > { %v564_v60 = vsel %vm537_vm6, %v563_v59, 0.0 }
 0x82d   : > { %v565_v61 = vrot.slane %v564_v60, 4 }
 0x82f   : > { %v566_v62 = vadd.f32 %v565_v61, %v564_v60 }
 0x831   : > { %v567_v63 = vrot.slane %v566_v62, 2 }
 0x833   : > { %v568_v1 = vadd.f32 %v567_v63, %v566_v62 }
 0x835   : > { %v569_v0 = vrot.slane %v568_v1, 1 }
 0x837   : > { %v570_v2 = vadd.f32 %v569_v0, %v568_v1 }
 0x839   : > { %v572_v3 = vmul.f32 0.5, %v570_v2 }
 0x83b   : > { %v578_v4 = vpack.c.bf16 %v572_v3, %v572_v3 }
 0x83d   : > { %822 = vmatmul.mubr.msk.bf16.vlgmr.msra.gmra.mrb[12].mxu0 %vm186_vm1, %v578_v4 }
 0x910   : > { %v622_v6 = vpop.f32.mrb[12].mxu0 }
 0x911   : > { %v623_v7 = vadd.f32 %v744_v5, %v622_v6  ;;  %v823_v8 = vpop.f32.mrb[13].mxu0 }
 0x912   : > { %v625_v9 = vpop.f32.mrb[14].mxu0 }
 0x913   : > { %628 = vst [vmem:[%s176_s27] sm:$0xff] %v623_v7  ;;  %v824_v10 = vpop.f32.mrb[15].mxu0 }
 0x914   : > { %965 = shalt.err (!%p962_p7)
}
 0x915   : > { %s966_s25 = scalar_lea.hbm %s1253_s6, 128  ;;  %s970_s29 = scalar_lea.hbm %s1298_s2, 512 }
 0x916   : > { %p967_p9 = scmp.ne.s32.totalorder %s1253_s6, %s966_s25  ;;  %p971_p5 = scmp.lt.u32.totalorder %s1253_s6, %s1298_s2 }
 0x917   : > { %p972_p2 = scmp.lt.u32.totalorder %s970_s29, %s966_s25  ;;  %p974_p4 = scmp.lt.u32.totalorder %s966_s25, %s1253_s6 }
 0x918   : > { %p968_p1 = pnand %p967_p9, %p1134_p12 }
 0x919   : > { %p973_p10 = por %p972_p2, %p971_p5 }
 0x91a   : > { %p969_p0 = pneg %p968_p1 }
 0x91b   : > { %p975_p6 = por %p974_p4, %p973_p10 }
 0x91d   : > { %p976_p8 = pnand %p975_p6, %p969_p0 }
 0x91f   : > { %979 = shalt.err (!%p976_p8)
}
 0x920   : > { %831 = dma.vmem_to_hbm [thread:$0]  (%p1134_p12), %s1255_s22, 128, %s1253_s6, %s630_s7  }
 0x921 PF: > { %p848_p11 = scmp.ge.s32.totalorder %s1022_s12, 2  ;;  %s655_s15 = sand.u32 1, %s1010_s9  }
 0x922   : > { %p1313_p13 = scmp.ne.s32.totalorder %s1303_s16, 0  ;;  %s656_s17 = scalar_lea.sflag [#allocation4], %s655_s15 }
 0x924   : > { %p842_p3 = pnand %p848_p11, %p1313_p13 }
 0x926   : > { %1005 = dma.done.wait (!%p842_p3), %s656_s17, 128  }
 0x927   : > { %1007 = vsyncadd (!%p842_p3), %s656_s17, 4294967168  ;;  %p16_p7 = scmp.ge.s32.totalorder %s1101_s21, 6   ;;  %s1314_s9 = smov %s1014_s10 }
 0x928   : > { %s1315_s10 = smov %s1018_s11  ;;  %s1316_s11 = smov %s1130_s8 }
 0x929   : > { %s1317_s12 = smov %s1101_s21  ;;  %18 = sbr.rel (!%p16_p7) target bundleno = 6 (0x6), region = 77 }
 0x930   :  { %661 = vsyncpa [#allocation3], 1 }
 0x931   :  { %663 = vsyncpa [#allocation3 + $0x1], 1 }
 0x932   :  { %664 = vsyncpa [#allocation6], 1 }
 0x933   :  { %665 = vsyncpa [#allocation4], 1 }
 0x934   :  { %667 = vsyncpa [#allocation4 + $0x1], 1 }

</bundles_post_ra>
